<compile_context>
chip_gen: v5e
topology: v5e:2x2
jax: 0.10.0
libtpu: 0.0.40
codegen_flags: <defaults>
</compile_context>

<pallas_src>
import functools
import math

import jax
import jax.numpy as jnp
from jax.experimental import pallas as pl
from jax.experimental.pallas import tpu as pltpu


# ----------------------------------------------------------------------------------
# Kernel bodies
# ----------------------------------------------------------------------------------
def _attend_and_pool(x_mean, q, k, v, wo_ref, bo_ref, out_ref, *, q_chunk):
    """Exact softmax attention + ReLU + mean-over-L pool + output projection.

    q is processed `q_chunk` rows at a time; every chunk sees the full key axis in
    the minor dim, so the softmax is exact while the L x L score matrix is never
    materialized (memory scales with q_chunk * L, not L^2).
    """
    tb, L, C = q.shape
    n_chunks = max(1, L // q_chunk)           # q_chunk divides L by construction
    acc = jnp.zeros((tb, C), jnp.float32)
    for c in range(n_chunks):                 # static unroll over q chunks
        qc = q[:, c * q_chunk:(c + 1) * q_chunk, :]                  # (tb, qc, C)
        s = jnp.einsum('bld,bmd->blm', qc, k,
                       preferred_element_type=jnp.float32)           # (tb, qc, L) f32
        m = jnp.max(s, axis=-1, keepdims=True)
        e = jnp.exp(s - m)
        # Exact EUP divide (off the VALU critical path); softmax stays in f32.
        a = e * pl.reciprocal(jnp.sum(e, axis=-1, keepdims=True), approx=False)
        r = jnp.einsum('blm,bmd->bld', a.astype(v.dtype), v,
                       preferred_element_type=jnp.float32)           # (tb, qc, C)
        acc = acc + jnp.sum(jnp.maximum(r, 0.0), axis=1)             # pooled sum
    rr_mean = acc * jnp.float32(1.0 / L)                             # mean_L relu(r)
    # Output conv is linear and followed only by the mean -> project the pooled
    # vector: (tb, C) @ (C, C) instead of (tb*L, C) @ (C, C).
    o = (jnp.dot(rr_mean.astype(wo_ref.dtype), wo_ref[...],
                 preferred_element_type=jnp.float32) + bo_ref[...])
    out_ref[0] = x_mean + o                                          # residual + pool


def _gm_kernel_fused(x_ref, wqkv_ref, bqkv_ref, wo_ref, bo_ref, out_ref, *, q_chunk):
    """C % 128 == 0: single fused Q|K|V MXU pass with lane-aligned slices."""
    x = x_ref[...]                                       # (tb, L, C) bf16
    tb, L, C = x.shape
    xr = jnp.maximum(x, 0)                               # ReLU feeding every projection
    qkv = (jnp.dot(xr.reshape(tb * L, C), wqkv_ref[...],
                   preferred_element_type=jnp.float32)
           + bqkv_ref[...]).reshape(tb, L, 3 * C)
    q = qkv[:, :, :C].astype(jnp.bfloat16)               # 1/sqrt(C) pre-folded into Wq
    k = qkv[:, :, C:2 * C].astype(jnp.bfloat16)
    v = qkv[:, :, 2 * C:].astype(jnp.bfloat16)
    x_mean = jnp.mean(x.astype(jnp.float32), axis=1)     # pooled residual term
    _attend_and_pool(x_mean, q, k, v, wo_ref, bo_ref, out_ref, q_chunk=q_chunk)


def _gm_kernel_split(x_ref, wq_ref, bq_ref, wk_ref, bk_ref, wv_ref, bv_ref,
                     wo_ref, bo_ref, out_ref, *, q_chunk):
    """C not a multiple of 128: three separate dots keep every buffer lane-aligned."""
    x = x_ref[...]                                       # (tb, L, C) bf16
    tb, L, C = x.shape
    xr2 = jnp.maximum(x, 0).reshape(tb * L, C)

    def proj(w_ref, b_ref):
        y = jnp.dot(xr2, w_ref[...], preferred_element_type=jnp.float32) + b_ref[...]
        return y.reshape(tb, L, C).astype(jnp.bfloat16)

    q = proj(wq_ref, bq_ref)                             # 1/sqrt(C) pre-folded into Wq
    k = proj(wk_ref, bk_ref)
    v = proj(wv_ref, bv_ref)
    x_mean = jnp.mean(x.astype(jnp.float32), axis=1)
    _attend_and_pool(x_mean, q, k, v, wo_ref, bo_ref, out_ref, q_chunk=q_chunk)


# ----------------------------------------------------------------------------------
# Tiling heuristics (generation-aware)
# ----------------------------------------------------------------------------------
def _vmem_capacity_bytes():
    try:
        return int(pltpu.get_tpu_info().vmem_capacity_bytes)
    except Exception:
        return 64 << 20           # conservative default (v7x per-TensorCore VMEM)


def _pick_batch_tile(B, L, C, vmem_cap):
    """Batch rows per grid step sized to ~60% of VMEM while keeping >=2 grid steps."""
    qc = min(L, 512)                                  # q-chunk target (see _pick_q_chunk)
    bytes_per_row = (
        2 * L * C * 2       # x block (bf16), double-buffered by the pipeline
        + 4 * L * C * 2     # relu(x) + q, k, v in bf16
        + 3 * L * C * 4     # f32 projection accumulators
        + qc * L * 10       # f32 scores + exp + bf16 softmax copy (per q-chunk)
        + qc * C * 4)       # f32 r chunk
    resident = 4 * C * C * 2 + 6 * C * 4              # bf16 weights + f32 biases
    budget = int(vmem_cap * 0.6) - resident
    tb = max(1, budget // max(bytes_per_row, 1))
    # Keep >= min(B, 4) grid steps: DMA/compute overlap + both v7x TCs via
    # dimension_semantics=("parallel",). (No forced tb>=8 any more.)
    if B > 1:
        tb = min(tb, max(1, B // min(B, 4)))
    tb = int(max(1, min(tb, B)))
    # Prefer a tb that divides B (no padded last step), without shrinking >2x.
    for cand in range(tb, max(tb // 2, 1) - 1, -1):
        if B % cand == 0:
            return cand
    return tb


def _pick_q_chunk(L, C, tb, vmem_cap):
    """Largest q-row chunk whose score working set stays under ~25% of VMEM."""
    budget = int(vmem_cap * 0.25)
    per_q_row = tb * (L * 10 + C * 4)       # f32 s+e, bf16 a, f32 r per q row
    if L * per_q_row <= budget:
        return L
    target = max(8, budget // max(per_q_row, 1))
    for cand in range(min(target, L), 7, -1):
        if L % cand == 0 and cand % 8 == 0:
            return cand                     # divisor of L, sublane-aligned
    # TODO(synk): for very large L with awkward factorizations, move the q loop to a
    #             grid axis (accumulator out_spec) instead of a static unroll.
    return L


def _weight_specs(weights, resident):
    if resident:
        # Whole array resident in VMEM: one copy, no per-step DMA, no double-buffer.
        return [pl.BlockSpec(memory_space=pltpu.MemorySpace.VMEM) for _ in weights]
    # Fallback: pipelined whole-array blocks with a constant index map.
    return [pl.BlockSpec(w.shape, lambda b: (0, 0)) for w in weights]


# ----------------------------------------------------------------------------------
# Wrapper
# ----------------------------------------------------------------------------------
def global_module_forward(x_ncl, params, *, batch_tile=None):
    """x_ncl: (B, planes, L) float32 -> (B, planes) float32."""
    B, C, L = x_ncl.shape
    wq, bq, wk, bk, wv, bv, wo, bo = params
    inv = jnp.float32(1.0 / math.sqrt(C))

    # Channels-last + bf16 cast in one XLA pass (halves the kernel's x DMA bytes).
    # TODO(synk): fuse this transpose/cast into the upstream producer to avoid the
    #             extra HBM round trip of x (worst on v5e's ~0.8 TB/s HBM).
    x_blc = jnp.transpose(x_ncl, (0, 2, 1)).astype(jnp.bfloat16)     # (B, L, C)

    # Conv1d weights are (Cout, Cin): transpose to (Cin, Cout), fold the 1/sqrt(C)
    # attention scale into the query projection, feed the MXU in bf16 (accumulation
    # stays f32 via preferred_element_type; biases stay f32).
    wq_t = (jnp.asarray(wq, jnp.float32).T * inv).astype(jnp.bfloat16)
    wk_t = jnp.asarray(wk, jnp.float32).T.astype(jnp.bfloat16)
    wv_t = jnp.asarray(wv, jnp.float32).T.astype(jnp.bfloat16)
    wo_t = jnp.asarray(wo, jnp.float32).T.astype(jnp.bfloat16)
    bq2 = (jnp.asarray(bq, jnp.float32) * inv).reshape(1, C)
    bk2 = jnp.asarray(bk, jnp.float32).reshape(1, C)
    bv2 = jnp.asarray(bv, jnp.float32).reshape(1, C)
    bo2 = jnp.asarray(bo, jnp.float32).reshape(1, C)

    vmem_cap = _vmem_capacity_bytes()
    tb = int(batch_tile) if batch_tile is not None else _pick_batch_tile(B, L, C, vmem_cap)
    q_chunk = _pick_q_chunk(L, C, tb, vmem_cap)
    num_blocks = pl.cdiv(B, tb)

    if C % 128 == 0:
        # Lane-aligned: fuse Q|K|V into a single (C, 3C) MXU pass.
        kernel = functools.partial(_gm_kernel_fused, q_chunk=q_chunk)
        w_args = (jnp.concatenate([wq_t, wk_t, wv_t], axis=1),
                  jnp.concatenate([bq2, bk2, bv2], axis=1), wo_t, bo2)
    else:
        # Non-128-multiple C: separate dots avoid lane slices crossing vreg tiles.
        kernel = functools.partial(_gm_kernel_split, q_chunk=q_chunk)
        w_args = (wq_t, bq2, wk_t, bk2, wv_t, bv2, wo_t, bo2)

    x_spec = pl.BlockSpec((tb, L, C), lambda b: (b, 0, 0))
    # (num_blocks, tb, C) output: last two block dims equal the full array dims for
    # ANY tb (legal tiling even when tb == 1); wrapper reshape to (B, C) is free.
    out_spec = pl.BlockSpec((1, tb, C), lambda b: (b, 0, 0))
    out_shape = jax.ShapeDtypeStruct((num_blocks, tb, C), jnp.float32)
    compiler_params = pltpu.CompilerParams(
        dimension_semantics=("parallel",),          # batch rows are independent
        vmem_limit_bytes=int(vmem_cap * 0.9))

    def call(resident_weights):
        return pl.pallas_call(
            kernel,
            out_shape=out_shape,
            grid_spec=pltpu.PrefetchScalarGridSpec(
                num_scalar_prefetch=0,
                grid=(num_blocks,),
                in_specs=[x_spec] + _weight_specs(w_args, resident_weights),
                out_specs=out_spec),
            compiler_params=compiler_params,
        )(x_blc, *w_args)

    # Preferred: weights resident in VMEM (single copy, halves weight footprint on
    # v7x). Fallback to standard pipelined specs if this runtime rejects the
    # memory-space placement. (Called eagerly, so compile errors surface here.)
    try:
        out = call(resident_weights=True)
    except Exception:
        out = call(resident_weights=False)

    return out.reshape(num_blocks * tb, C)[:B]                        # (B, C)


# ----------------------------------------------------------------------------------
# Reference + demo
# ----------------------------------------------------------------------------------
def _reference(x_ncl, params):
    """Pure-JAX f32 reference mirroring the PyTorch forward (NCL layout)."""
    wq, bq, wk, bk, wv, bv, wo, bo = params
    C = x_ncl.shape[1]

    def conv1x1(z, w, b):   # z: (B, C, L)
        return jnp.einsum('oc,bcl->bol', w, z) + b[None, :, None]

    xr = jax.nn.relu(x_ncl)
    q = jnp.transpose(conv1x1(xr, wq, bq), (0, 2, 1))   # (B, L, C)
    k = conv1x1(xr, wk, bk)                             # (B, C, L)
    v = jnp.transpose(conv1x1(xr, wv, bv), (0, 2, 1))   # (B, L, C)
    s = jnp.einsum('blc,bcm->blm', q, k) / math.sqrt(C)
    a = jax.nn.softmax(s, axis=2)
    r = jnp.einsum('blm,bmc->blc', a, v)
    r = jnp.transpose(r, (0, 2, 1))                     # (B, C, L)
    r = conv1x1(jax.nn.relu(r), wo, bo)
    y = x_ncl + r
    return jnp.mean(y, axis=2)                          # (B, C)


def _init_params(key, planes):
    """Deterministic init matching PyTorch Conv1d default bounds (fan_in = planes)."""
    bound = 1.0 / math.sqrt(planes)
    keys = jax.random.split(key, 8)

    def u(k, shape):
        return jax.random.uniform(k, shape, jnp.float32, minval=-bound, maxval=bound)

    wq, bq = u(keys[0], (planes, planes)), u(keys[1], (planes,))
    wk, bk = u(keys[2], (planes, planes)), u(keys[3], (planes,))
    wv, bv = u(keys[4], (planes, planes)), u(keys[5], (planes,))
    wo, bo = u(keys[6], (planes, planes)), u(keys[7], (planes,))
    return (wq, bq, wk, bk, wv, bv, wo, bo)


if __name__ == "__main__":
    # Small shapes consistent with the module: x is (batch, planes, seq_len).
    B, planes, L = 2, 16, 8

    key = jax.random.PRNGKey(0)
    k_x, k_p = jax.random.split(key)
    x = jax.random.normal(k_x, (B, planes, L), dtype=jnp.float32)
    params = _init_params(k_p, planes)

    out = jax.block_until_ready(global_module_forward(x, params))
    ref = _reference(x, params)

    assert out.shape == (B, planes), out.shape
    # Tolerance reflects bf16 MXU feeds (weights/activations); softmax and all
    # accumulation stay in f32 and the softmax reciprocal is the exact EUP divide.
    err = jnp.max(jnp.abs(out - ref))
    assert jnp.allclose(out, ref, rtol=2e-2, atol=2e-2), f"max abs err = {err}"

    print("KERNEL_OK")
</pallas_src>

<mosaic_0001>
module attributes {stable_mosaic.version = 11 : i64} {
  func.func @_gm_kernel_split(%arg0: i32, %arg1: memref<1x8x16xbf16, #tpu.memory_space<vmem>>, %arg2: memref<16x16xbf16, #tpu.memory_space<vmem>>, %arg3: memref<1x16xf32, #tpu.memory_space<vmem>>, %arg4: memref<16x16xbf16, #tpu.memory_space<vmem>>, %arg5: memref<1x16xf32, #tpu.memory_space<vmem>>, %arg6: memref<16x16xbf16, #tpu.memory_space<vmem>>, %arg7: memref<1x16xf32, #tpu.memory_space<vmem>>, %arg8: memref<16x16xbf16, #tpu.memory_space<vmem>>, %arg9: memref<1x16xf32, #tpu.memory_space<vmem>>, %arg10: memref<1x1x16xf32, #tpu.memory_space<vmem>>) attributes {dimension_semantics = [#tpu.dimension_semantics<parallel>], iteration_bounds = array<i64: 2>, scalar_prefetch = 0 : i64, scratch_operands = 0 : i64, tpu.core_type = #tpu.core_type<tc>, window_params = [{transform_indices = @transform_0, window_bounds = array<i64: 1, 8, 16>}, {pipeline_mode = #tpu.pipeline_mode<synchronous>, transform_indices = @transform_1, window_bounds = array<i64: 16, 16>}, {pipeline_mode = #tpu.pipeline_mode<synchronous>, transform_indices = @transform_2, window_bounds = array<i64: 1, 16>}, {pipeline_mode = #tpu.pipeline_mode<synchronous>, transform_indices = @transform_3, window_bounds = array<i64: 16, 16>}, {pipeline_mode = #tpu.pipeline_mode<synchronous>, transform_indices = @transform_4, window_bounds = array<i64: 1, 16>}, {pipeline_mode = #tpu.pipeline_mode<synchronous>, transform_indices = @transform_5, window_bounds = array<i64: 16, 16>}, {pipeline_mode = #tpu.pipeline_mode<synchronous>, transform_indices = @transform_6, window_bounds = array<i64: 1, 16>}, {pipeline_mode = #tpu.pipeline_mode<synchronous>, transform_indices = @transform_7, window_bounds = array<i64: 16, 16>}, {pipeline_mode = #tpu.pipeline_mode<synchronous>, transform_indices = @transform_8, window_bounds = array<i64: 1, 16>}, {transform_indices = @transform_9, window_bounds = array<i64: 1, 1, 16>}]} {
    %c0 = arith.constant 0 : index
    %c0_0 = arith.constant 0 : index
    %c0_1 = arith.constant 0 : index
    %0 = vector.load %arg1[%c0, %c0_0, %c0_1] : memref<1x8x16xbf16, #tpu.memory_space<vmem>>, vector<1x8x16xbf16>
    %cst = arith.constant 0.000000e+00 : bf16
    %1 = vector.broadcast %cst : bf16 to vector<1x8x16xbf16>
    %2 = arith.maximumf %0, %1 : vector<1x8x16xbf16>
    %3 = vector.shape_cast %2 : vector<1x8x16xbf16> to vector<8x16xbf16>
    %c0_2 = arith.constant 0 : index
    %c0_3 = arith.constant 0 : index
    %4 = vector.load %arg2[%c0_2, %c0_3] : memref<16x16xbf16, #tpu.memory_space<vmem>>, vector<16x16xbf16>
    %cst_4 = arith.constant dense<0.000000e+00> : vector<8x16xf32>
    %5 = tpu.matmul %3, %4, %cst_4 {dimension_numbers = #tpu.dot_dimension_numbers<[1], [0], [0], [1], [0, 0, 1, 1], [], []>} : vector<8x16xbf16>, vector<16x16xbf16>, vector<8x16xf32> -> vector<8x16xf32>
    %c0_5 = arith.constant 0 : index
    %c0_6 = arith.constant 0 : index
    %6 = vector.load %arg3[%c0_5, %c0_6] : memref<1x16xf32, #tpu.memory_space<vmem>>, vector<1x16xf32>
    %7 = vector.broadcast %6 : vector<1x16xf32> to vector<8x16xf32>
    %8 = arith.addf %5, %7 : vector<8x16xf32>
    %9 = vector.shape_cast %8 : vector<8x16xf32> to vector<1x8x16xf32>
    %10 = arith.truncf %9 : vector<1x8x16xf32> to vector<1x8x16xbf16>
    %c0_7 = arith.constant 0 : index
    %c0_8 = arith.constant 0 : index
    %11 = vector.load %arg4[%c0_7, %c0_8] : memref<16x16xbf16, #tpu.memory_space<vmem>>, vector<16x16xbf16>
    %cst_9 = arith.constant dense<0.000000e+00> : vector<8x16xf32>
    %12 = tpu.matmul %3, %11, %cst_9 {dimension_numbers = #tpu.dot_dimension_numbers<[1], [0], [0], [1], [0, 0, 1, 1], [], []>} : vector<8x16xbf16>, vector<16x16xbf16>, vector<8x16xf32> -> vector<8x16xf32>
    %c0_10 = arith.constant 0 : index
    %c0_11 = arith.constant 0 : index
    %13 = vector.load %arg5[%c0_10, %c0_11] : memref<1x16xf32, #tpu.memory_space<vmem>>, vector<1x16xf32>
    %14 = vector.broadcast %13 : vector<1x16xf32> to vector<8x16xf32>
    %15 = arith.addf %12, %14 : vector<8x16xf32>
    %16 = vector.shape_cast %15 : vector<8x16xf32> to vector<1x8x16xf32>
    %17 = arith.truncf %16 : vector<1x8x16xf32> to vector<1x8x16xbf16>
    %c0_12 = arith.constant 0 : index
    %c0_13 = arith.constant 0 : index
    %18 = vector.load %arg6[%c0_12, %c0_13] : memref<16x16xbf16, #tpu.memory_space<vmem>>, vector<16x16xbf16>
    %cst_14 = arith.constant dense<0.000000e+00> : vector<8x16xf32>
    %19 = tpu.matmul %3, %18, %cst_14 {dimension_numbers = #tpu.dot_dimension_numbers<[1], [0], [0], [1], [0, 0, 1, 1], [], []>} : vector<8x16xbf16>, vector<16x16xbf16>, vector<8x16xf32> -> vector<8x16xf32>
    %c0_15 = arith.constant 0 : index
    %c0_16 = arith.constant 0 : index
    %20 = vector.load %arg7[%c0_15, %c0_16] : memref<1x16xf32, #tpu.memory_space<vmem>>, vector<1x16xf32>
    %21 = vector.broadcast %20 : vector<1x16xf32> to vector<8x16xf32>
    %22 = arith.addf %19, %21 : vector<8x16xf32>
    %23 = vector.shape_cast %22 : vector<8x16xf32> to vector<1x8x16xf32>
    %24 = arith.truncf %23 : vector<1x8x16xf32> to vector<1x8x16xbf16>
    %25 = arith.extf %0 : vector<1x8x16xbf16> to vector<1x8x16xf32>
    %cst_17 = arith.constant dense<0.000000e+00> : vector<1x16xf32>
    %26 = vector.multi_reduction <add>, %25, %cst_17 [1] : vector<1x8x16xf32> to vector<1x16xf32>
    %cst_18 = arith.constant 8.000000e+00 : f32
    %27 = vector.broadcast %cst_18 : f32 to vector<1x16xf32>
    %28 = arith.divf %26, %27 : vector<1x16xf32>
    %cst_19 = arith.constant 0.000000e+00 : f32
    %29 = vector.broadcast %cst_19 : f32 to vector<1x16xf32>
    "tpu.trace_start"() <{level = 10 : i32, message = "bld,bmd->blm"}> : () -> ()
    %cst_20 = arith.constant dense<0.000000e+00> : vector<1x8x8xf32>
    %30 = tpu.matmul %10, %17, %cst_20 {dimension_numbers = #tpu.dot_dimension_numbers<[2], [2], [1], [1], [0, 0, 0, 1, 1, 1], [0], [0]>} : vector<1x8x16xbf16>, vector<1x8x16xbf16>, vector<1x8x8xf32> -> vector<1x8x8xf32>
    "tpu.trace_stop"() : () -> ()
    %cst_21 = arith.constant dense<0xFF800000> : vector<1x8xf32>
    %31 = vector.multi_reduction <maximumf>, %30, %cst_21 [2] : vector<1x8x8xf32> to vector<1x8xf32>
    %32 = vector.shape_cast %31 : vector<1x8xf32> to vector<1x8x1xf32>
    %33 = vector.broadcast %32 : vector<1x8x1xf32> to vector<1x8x8xf32>
    %34 = arith.subf %30, %33 : vector<1x8x8xf32>
    %35 = math.exp %34 : vector<1x8x8xf32>
    %cst_22 = arith.constant dense<0.000000e+00> : vector<1x8xf32>
    %36 = vector.multi_reduction <add>, %35, %cst_22 [2] : vector<1x8x8xf32> to vector<1x8xf32>
    %37 = vector.shape_cast %36 : vector<1x8xf32> to vector<1x8x1xf32>
    %38 = tpu.reciprocal %37 : vector<1x8x1xf32> -> vector<1x8x1xf32>
    %39 = vector.broadcast %38 : vector<1x8x1xf32> to vector<1x8x8xf32>
    %40 = arith.mulf %35, %39 : vector<1x8x8xf32>
    %41 = arith.truncf %40 : vector<1x8x8xf32> to vector<1x8x8xbf16>
    "tpu.trace_start"() <{level = 10 : i32, message = "blm,bmd->bld"}> : () -> ()
    %cst_23 = arith.constant dense<0.000000e+00> : vector<1x8x16xf32>
    %42 = tpu.matmul %41, %24, %cst_23 {dimension_numbers = #tpu.dot_dimension_numbers<[2], [1], [1], [2], [0, 0, 0, 1, 1, 2], [0], [0]>} : vector<1x8x8xbf16>, vector<1x8x16xbf16>, vector<1x8x16xf32> -> vector<1x8x16xf32>
    "tpu.trace_stop"() : () -> ()
    %cst_24 = arith.constant 0.000000e+00 : f32
    %43 = vector.broadcast %cst_24 : f32 to vector<1x8x16xf32>
    %44 = arith.maximumf %42, %43 : vector<1x8x16xf32>
    %cst_25 = arith.constant dense<0.000000e+00> : vector<1x16xf32>
    %45 = vector.multi_reduction <add>, %44, %cst_25 [1] : vector<1x8x16xf32> to vector<1x16xf32>
    %46 = arith.addf %29, %45 : vector<1x16xf32>
    %cst_26 = arith.constant 1.250000e-01 : f32
    %47 = vector.broadcast %cst_26 : f32 to vector<1x16xf32>
    %48 = arith.mulf %46, %47 : vector<1x16xf32>
    %49 = arith.truncf %48 : vector<1x16xf32> to vector<1x16xbf16>
    %c0_27 = arith.constant 0 : index
    %c0_28 = arith.constant 0 : index
    %50 = vector.load %arg8[%c0_27, %c0_28] : memref<16x16xbf16, #tpu.memory_space<vmem>>, vector<16x16xbf16>
    %cst_29 = arith.constant dense<0.000000e+00> : vector<1x16xf32>
    %51 = tpu.matmul %49, %50, %cst_29 {dimension_numbers = #tpu.dot_dimension_numbers<[1], [0], [0], [1], [0, 0, 1, 1], [], []>} : vector<1x16xbf16>, vector<16x16xbf16>, vector<1x16xf32> -> vector<1x16xf32>
    %c0_30 = arith.constant 0 : index
    %c0_31 = arith.constant 0 : index
    %52 = vector.load %arg9[%c0_30, %c0_31] : memref<1x16xf32, #tpu.memory_space<vmem>>, vector<1x16xf32>
    %53 = arith.addf %51, %52 : vector<1x16xf32>
    %54 = arith.addf %28, %53 : vector<1x16xf32>
    %c0_32 = arith.constant 0 : index
    %c0_33 = arith.constant 0 : index
    %c0_34 = arith.constant 0 : index
    %55 = vector.load %arg10[%c0_32, %c0_33, %c0_34] : memref<1x1x16xf32, #tpu.memory_space<vmem>>, vector<1x1x16xf32>
    %56 = vector.shape_cast %55 : vector<1x1x16xf32> to vector<1x16xf32>
    %57 = vector.shape_cast %54 : vector<1x16xf32> to vector<1x1x16xf32>
    tpu.vector_store %arg10[%c0_32, %c0_33, %c0_34], %57 {strides = array<i32>} : memref<1x1x16xf32, #tpu.memory_space<vmem>>, vector<1x1x16xf32>,
    return
  }
  func.func @transform_0(%arg0: i32) -> (i32, i32, i32) {
    %c0_i32 = arith.constant 0 : i32
    %c0_i32_0 = arith.constant 0 : i32
    %c0_i32_1 = arith.constant 0 : i32
    return %arg0, %c0_i32, %c0_i32_0 : i32, i32, i32
  }
  func.func @transform_1(%arg0: i32) -> (i32, i32) {
    %c0_i32 = arith.constant 0 : i32
    %c0_i32_0 = arith.constant 0 : i32
    %c0_i32_1 = arith.constant 0 : i32
    return %c0_i32, %c0_i32_0 : i32, i32
  }
  func.func @transform_2(%arg0: i32) -> (i32, i32) {
    %c0_i32 = arith.constant 0 : i32
    %c0_i32_0 = arith.constant 0 : i32
    %c0_i32_1 = arith.constant 0 : i32
    return %c0_i32, %c0_i32_0 : i32, i32
  }
  func.func @transform_3(%arg0: i32) -> (i32, i32) {
    %c0_i32 = arith.constant 0 : i32
    %c0_i32_0 = arith.constant 0 : i32
    %c0_i32_1 = arith.constant 0 : i32
    return %c0_i32, %c0_i32_0 : i32, i32
  }
  func.func @transform_4(%arg0: i32) -> (i32, i32) {
    %c0_i32 = arith.constant 0 : i32
    %c0_i32_0 = arith.constant 0 : i32
    %c0_i32_1 = arith.constant 0 : i32
    return %c0_i32, %c0_i32_0 : i32, i32
  }
  func.func @transform_5(%arg0: i32) -> (i32, i32) {
    %c0_i32 = arith.constant 0 : i32
    %c0_i32_0 = arith.constant 0 : i32
    %c0_i32_1 = arith.constant 0 : i32
    return %c0_i32, %c0_i32_0 : i32, i32
  }
  func.func @transform_6(%arg0: i32) -> (i32, i32) {
    %c0_i32 = arith.constant 0 : i32
    %c0_i32_0 = arith.constant 0 : i32
    %c0_i32_1 = arith.constant 0 : i32
    return %c0_i32, %c0_i32_0 : i32, i32
  }
  func.func @transform_7(%arg0: i32) -> (i32, i32) {
    %c0_i32 = arith.constant 0 : i32
    %c0_i32_0 = arith.constant 0 : i32
    %c0_i32_1 = arith.constant 0 : i32
    return %c0_i32, %c0_i32_0 : i32, i32
  }
  func.func @transform_8(%arg0: i32) -> (i32, i32) {
    %c0_i32 = arith.constant 0 : i32
    %c0_i32_0 = arith.constant 0 : i32
    %c0_i32_1 = arith.constant 0 : i32
    return %c0_i32, %c0_i32_0 : i32, i32
  }
  func.func @transform_9(%arg0: i32) -> (i32, i32, i32) {
    %c0_i32 = arith.constant 0 : i32
    %c0_i32_0 = arith.constant 0 : i32
    %c0_i32_1 = arith.constant 0 : i32
    return %arg0, %c0_i32, %c0_i32_0 : i32, i32, i32
  }
}

module attributes {stable_mosaic.version = 11 : i64} {
  func.func @_gm_kernel_split(%arg0: i32, %arg1: memref<1x8x16xbf16, #tpu.memory_space<vmem>>, %arg2: memref<16x16xbf16, #tpu.memory_space<vmem>>, %arg3: memref<1x16xf32, #tpu.memory_space<vmem>>, %arg4: memref<16x16xbf16, #tpu.memory_space<vmem>>, %arg5: memref<1x16xf32, #tpu.memory_space<vmem>>, %arg6: memref<16x16xbf16, #tpu.memory_space<vmem>>, %arg7: memref<1x16xf32, #tpu.memory_space<vmem>>, %arg8: memref<16x16xbf16, #tpu.memory_space<vmem>>, %arg9: memref<1x16xf32, #tpu.memory_space<vmem>>, %arg10: memref<1x1x16xf32, #tpu.memory_space<vmem>>) attributes {dimension_semantics = [#tpu.dimension_semantics<parallel>], iteration_bounds = array<i64: 2>, scalar_prefetch = 0 : i64, scratch_operands = 0 : i64, tpu.core_type = #tpu.core_type<tc>, window_params = [{transform_indices = @transform_0, window_bounds = array<i64: 1, 8, 16>}, {pipeline_mode = #tpu.pipeline_mode<synchronous>, transform_indices = @transform_1, window_bounds = array<i64: 16, 16>}, {pipeline_mode = #tpu.pipeline_mode<synchronous>, transform_indices = @transform_2, window_bounds = array<i64: 1, 16>}, {pipeline_mode = #tpu.pipeline_mode<synchronous>, transform_indices = @transform_3, window_bounds = array<i64: 16, 16>}, {pipeline_mode = #tpu.pipeline_mode<synchronous>, transform_indices = @transform_4, window_bounds = array<i64: 1, 16>}, {pipeline_mode = #tpu.pipeline_mode<synchronous>, transform_indices = @transform_5, window_bounds = array<i64: 16, 16>}, {pipeline_mode = #tpu.pipeline_mode<synchronous>, transform_indices = @transform_6, window_bounds = array<i64: 1, 16>}, {pipeline_mode = #tpu.pipeline_mode<synchronous>, transform_indices = @transform_7, window_bounds = array<i64: 16, 16>}, {pipeline_mode = #tpu.pipeline_mode<synchronous>, transform_indices = @transform_8, window_bounds = array<i64: 1, 16>}, {transform_indices = @transform_9, window_bounds = array<i64: 1, 1, 16>}]} {
    %c0 = arith.constant 0 : index
    %c0_0 = arith.constant 0 : index
    %c0_1 = arith.constant 0 : index
    %0 = vector.load %arg1[%c0, %c0_0, %c0_1] : memref<1x8x16xbf16, #tpu.memory_space<vmem>>, vector<1x8x16xbf16>
    %cst = arith.constant 0.000000e+00 : bf16
    %1 = vector.broadcast %cst : bf16 to vector<1x8x16xbf16>
    %2 = arith.maximumf %0, %1 : vector<1x8x16xbf16>
    %3 = vector.shape_cast %2 : vector<1x8x16xbf16> to vector<8x16xbf16>
    %c0_2 = arith.constant 0 : index
    %c0_3 = arith.constant 0 : index
    %4 = vector.load %arg2[%c0_2, %c0_3] : memref<16x16xbf16, #tpu.memory_space<vmem>>, vector<16x16xbf16>
    %cst_4 = arith.constant dense<0.000000e+00> : vector<8x16xf32>
    %5 = tpu.matmul %3, %4, %cst_4 {dimension_numbers = #tpu.dot_dimension_numbers<[1], [0], [0], [1], [0, 0, 1, 1], [], []>} : vector<8x16xbf16>, vector<16x16xbf16>, vector<8x16xf32> -> vector<8x16xf32>
    %c0_5 = arith.constant 0 : index
    %c0_6 = arith.constant 0 : index
    %6 = vector.load %arg3[%c0_5, %c0_6] : memref<1x16xf32, #tpu.memory_space<vmem>>, vector<1x16xf32>
    %7 = vector.broadcast %6 : vector<1x16xf32> to vector<8x16xf32>
    %8 = arith.addf %5, %7 : vector<8x16xf32>
    %9 = vector.shape_cast %8 : vector<8x16xf32> to vector<1x8x16xf32>
    %10 = arith.truncf %9 : vector<1x8x16xf32> to vector<1x8x16xbf16>
    %c0_7 = arith.constant 0 : index
    %c0_8 = arith.constant 0 : index
    %11 = vector.load %arg4[%c0_7, %c0_8] : memref<16x16xbf16, #tpu.memory_space<vmem>>, vector<16x16xbf16>
    %cst_9 = arith.constant dense<0.000000e+00> : vector<8x16xf32>
    %12 = tpu.matmul %3, %11, %cst_9 {dimension_numbers = #tpu.dot_dimension_numbers<[1], [0], [0], [1], [0, 0, 1, 1], [], []>} : vector<8x16xbf16>, vector<16x16xbf16>, vector<8x16xf32> -> vector<8x16xf32>
    %c0_10 = arith.constant 0 : index
    %c0_11 = arith.constant 0 : index
    %13 = vector.load %arg5[%c0_10, %c0_11] : memref<1x16xf32, #tpu.memory_space<vmem>>, vector<1x16xf32>
    %14 = vector.broadcast %13 : vector<1x16xf32> to vector<8x16xf32>
    %15 = arith.addf %12, %14 : vector<8x16xf32>
    %16 = vector.shape_cast %15 : vector<8x16xf32> to vector<1x8x16xf32>
    %17 = arith.truncf %16 : vector<1x8x16xf32> to vector<1x8x16xbf16>
    %c0_12 = arith.constant 0 : index
    %c0_13 = arith.constant 0 : index
    %18 = vector.load %arg6[%c0_12, %c0_13] : memref<16x16xbf16, #tpu.memory_space<vmem>>, vector<16x16xbf16>
    %cst_14 = arith.constant dense<0.000000e+00> : vector<8x16xf32>
    %19 = tpu.matmul %3, %18, %cst_14 {dimension_numbers = #tpu.dot_dimension_numbers<[1], [0], [0], [1], [0, 0, 1, 1], [], []>} : vector<8x16xbf16>, vector<16x16xbf16>, vector<8x16xf32> -> vector<8x16xf32>
    %c0_15 = arith.constant 0 : index
    %c0_16 = arith.constant 0 : index
    %20 = vector.load %arg7[%c0_15, %c0_16] : memref<1x16xf32, #tpu.memory_space<vmem>>, vector<1x16xf32>
    %21 = vector.broadcast %20 : vector<1x16xf32> to vector<8x16xf32>
    %22 = arith.addf %19, %21 : vector<8x16xf32>
    %23 = vector.shape_cast %22 : vector<8x16xf32> to vector<1x8x16xf32>
    %24 = arith.truncf %23 : vector<1x8x16xf32> to vector<1x8x16xbf16>
    %25 = arith.extf %0 : vector<1x8x16xbf16> to vector<1x8x16xf32>
    %cst_17 = arith.constant dense<0.000000e+00> : vector<1x16xf32>
    %26 = vector.multi_reduction <add>, %25, %cst_17 [1] : vector<1x8x16xf32> to vector<1x16xf32>
    %cst_18 = arith.constant 8.000000e+00 : f32
    %27 = vector.broadcast %cst_18 : f32 to vector<1x16xf32>
    %28 = arith.divf %26, %27 : vector<1x16xf32>
    %cst_19 = arith.constant 0.000000e+00 : f32
    %29 = vector.broadcast %cst_19 : f32 to vector<1x16xf32>
    "tpu.trace_start"() <{level = 10 : i32, message = "bld,bmd->blm"}> : () -> ()
    %cst_20 = arith.constant dense<0.000000e+00> : vector<1x8x8xf32>
    %30 = tpu.matmul %10, %17, %cst_20 {dimension_numbers = #tpu.dot_dimension_numbers<[2], [2], [1], [1], [0, 0, 0, 1, 1, 1], [0], [0]>} : vector<1x8x16xbf16>, vector<1x8x16xbf16>, vector<1x8x8xf32> -> vector<1x8x8xf32>
    "tpu.trace_stop"() : () -> ()
    %cst_21 = arith.constant dense<0xFF800000> : vector<1x8xf32>
    %31 = vector.multi_reduction <maximumf>, %30, %cst_21 [2] : vector<1x8x8xf32> to vector<1x8xf32>
    %32 = vector.shape_cast %31 : vector<1x8xf32> to vector<1x8x1xf32>
    %33 = vector.broadcast %32 : vector<1x8x1xf32> to vector<1x8x8xf32>
    %34 = arith.subf %30, %33 : vector<1x8x8xf32>
    %35 = math.exp %34 : vector<1x8x8xf32>
    %cst_22 = arith.constant dense<0.000000e+00> : vector<1x8xf32>
    %36 = vector.multi_reduction <add>, %35, %cst_22 [2] : vector<1x8x8xf32> to vector<1x8xf32>
    %37 = vector.shape_cast %36 : vector<1x8xf32> to vector<1x8x1xf32>
    %38 = tpu.reciprocal %37 : vector<1x8x1xf32> -> vector<1x8x1xf32>
    %39 = vector.broadcast %38 : vector<1x8x1xf32> to vector<1x8x8xf32>
    %40 = arith.mulf %35, %39 : vector<1x8x8xf32>
    %41 = arith.truncf %40 : vector<1x8x8xf32> to vector<1x8x8xbf16>
    "tpu.trace_start"() <{level = 10 : i32, message = "blm,bmd->bld"}> : () -> ()
    %cst_23 = arith.constant dense<0.000000e+00> : vector<1x8x16xf32>
    %42 = tpu.matmul %41, %24, %cst_23 {dimension_numbers = #tpu.dot_dimension_numbers<[2], [1], [1], [2], [0, 0, 0, 1, 1, 2], [0], [0]>} : vector<1x8x8xbf16>, vector<1x8x16xbf16>, vector<1x8x16xf32> -> vector<1x8x16xf32>
    "tpu.trace_stop"() : () -> ()
    %cst_24 = arith.constant 0.000000e+00 : f32
    %43 = vector.broadcast %cst_24 : f32 to vector<1x8x16xf32>
    %44 = arith.maximumf %42, %43 : vector<1x8x16xf32>
    %cst_25 = arith.constant dense<0.000000e+00> : vector<1x16xf32>
    %45 = vector.multi_reduction <add>, %44, %cst_25 [1] : vector<1x8x16xf32> to vector<1x16xf32>
    %46 = arith.addf %29, %45 : vector<1x16xf32>
    %cst_26 = arith.constant 1.250000e-01 : f32
    %47 = vector.broadcast %cst_26 : f32 to vector<1x16xf32>
    %48 = arith.mulf %46, %47 : vector<1x16xf32>
    %49 = arith.truncf %48 : vector<1x16xf32> to vector<1x16xbf16>
    %c0_27 = arith.constant 0 : index
    %c0_28 = arith.constant 0 : index
    %50 = vector.load %arg8[%c0_27, %c0_28] : memref<16x16xbf16, #tpu.memory_space<vmem>>, vector<16x16xbf16>
    %cst_29 = arith.constant dense<0.000000e+00> : vector<1x16xf32>
    %51 = tpu.matmul %49, %50, %cst_29 {dimension_numbers = #tpu.dot_dimension_numbers<[1], [0], [0], [1], [0, 0, 1, 1], [], []>} : vector<1x16xbf16>, vector<16x16xbf16>, vector<1x16xf32> -> vector<1x16xf32>
    %c0_30 = arith.constant 0 : index
    %c0_31 = arith.constant 0 : index
    %52 = vector.load %arg9[%c0_30, %c0_31] : memref<1x16xf32, #tpu.memory_space<vmem>>, vector<1x16xf32>
    %53 = arith.addf %51, %52 : vector<1x16xf32>
    %54 = arith.addf %28, %53 : vector<1x16xf32>
    %c0_32 = arith.constant 0 : index
    %c0_33 = arith.constant 0 : index
    %c0_34 = arith.constant 0 : index
    %55 = vector.load %arg10[%c0_32, %c0_33, %c0_34] : memref<1x1x16xf32, #tpu.memory_space<vmem>>, vector<1x1x16xf32>
    %56 = vector.shape_cast %55 : vector<1x1x16xf32> to vector<1x16xf32>
    %57 = vector.shape_cast %54 : vector<1x16xf32> to vector<1x1x16xf32>
    tpu.vector_store %arg10[%c0_32, %c0_33, %c0_34], %57 {strides = array<i32>} : memref<1x1x16xf32, #tpu.memory_space<vmem>>, vector<1x1x16xf32>,
    return
  }
  func.func @transform_0(%arg0: i32) -> (i32, i32, i32) {
    %c0_i32 = arith.constant 0 : i32
    %c0_i32_0 = arith.constant 0 : i32
    %c0_i32_1 = arith.constant 0 : i32
    return %arg0, %c0_i32, %c0_i32_0 : i32, i32, i32
  }
  func.func @transform_1(%arg0: i32) -> (i32, i32) {
    %c0_i32 = arith.constant 0 : i32
    %c0_i32_0 = arith.constant 0 : i32
    %c0_i32_1 = arith.constant 0 : i32
    return %c0_i32, %c0_i32_0 : i32, i32
  }
  func.func @transform_2(%arg0: i32) -> (i32, i32) {
    %c0_i32 = arith.constant 0 : i32
    %c0_i32_0 = arith.constant 0 : i32
    %c0_i32_1 = arith.constant 0 : i32
    return %c0_i32, %c0_i32_0 : i32, i32
  }
  func.func @transform_3(%arg0: i32) -> (i32, i32) {
    %c0_i32 = arith.constant 0 : i32
    %c0_i32_0 = arith.constant 0 : i32
    %c0_i32_1 = arith.constant 0 : i32
    return %c0_i32, %c0_i32_0 : i32, i32
  }
  func.func @transform_4(%arg0: i32) -> (i32, i32) {
    %c0_i32 = arith.constant 0 : i32
    %c0_i32_0 = arith.constant 0 : i32
    %c0_i32_1 = arith.constant 0 : i32
    return %c0_i32, %c0_i32_0 : i32, i32
  }
  func.func @transform_5(%arg0: i32) -> (i32, i32) {
    %c0_i32 = arith.constant 0 : i32
    %c0_i32_0 = arith.constant 0 : i32
    %c0_i32_1 = arith.constant 0 : i32
    return %c0_i32, %c0_i32_0 : i32, i32
  }
  func.func @transform_6(%arg0: i32) -> (i32, i32) {
    %c0_i32 = arith.constant 0 : i32
    %c0_i32_0 = arith.constant 0 : i32
    %c0_i32_1 = arith.constant 0 : i32
    return %c0_i32, %c0_i32_0 : i32, i32
  }
  func.func @transform_7(%arg0: i32) -> (i32, i32) {
    %c0_i32 = arith.constant 0 : i32
    %c0_i32_0 = arith.constant 0 : i32
    %c0_i32_1 = arith.constant 0 : i32
    return %c0_i32, %c0_i32_0 : i32, i32
  }
  func.func @transform_8(%arg0: i32) -> (i32, i32) {
    %c0_i32 = arith.constant 0 : i32
    %c0_i32_0 = arith.constant 0 : i32
    %c0_i32_1 = arith.constant 0 : i32
    return %c0_i32, %c0_i32_0 : i32, i32
  }
  func.func @transform_9(%arg0: i32) -> (i32, i32, i32) {
    %c0_i32 = arith.constant 0 : i32
    %c0_i32_0 = arith.constant 0 : i32
    %c0_i32_1 = arith.constant 0 : i32
    return %arg0, %c0_i32, %c0_i32_0 : i32, i32, i32
  }
}

</mosaic_0001>

<bundles_post_ra>
// kernel: tpu_custom_call.1
= control target key start
LH: loop header
LB: loop body
LE: loop exit
PB: predicated region body
PF: predicated region fallthrough
CT: control target
= control target key end

     0   :  { %s1361_s0 = inlined_call_operand.hbm [shape: bf16[2,8,16], index: 0, kind: input, shape index: {}]   ;;  %s1362_s1 = inlined_call_operand.hbm [shape: bf16[16,16], index: 1, kind: input, shape index: {}]   ;;  %s1363_s2 = inlined_call_operand.vmem [shape: f32[1,16], index: 2, kind: input, shape index: {}]   ;;  %s1364_s3 = inlined_call_operand.hbm [shape: bf16[16,16], index: 3, kind: input, shape index: {}]   ;;  %s1365_s4 = inlined_call_operand.vmem [shape: f32[1,16], index: 4, kind: input, shape index: {}]   ;;  %s1366_s5 = inlined_call_operand.hbm [shape: bf16[16,16], index: 5, kind: input, shape index: {}]   ;;  %s1367_s6 = inlined_call_operand.vmem [shape: f32[1,16], index: 6, kind: input, shape index: {}]   ;;  %s1368_s7 = inlined_call_operand.hbm [shape: bf16[16,16], index: 7, kind: input, shape index: {}]   ;;  %s1369_s8 = inlined_call_operand.vmem [shape: f32[1,16], index: 8, kind: input, shape index: {}]   ;;  %s1370_s9 = inlined_call_operand.hbm [shape: f32[2,1,16], index: 9, kind: output, shape index: {}]  }
   0x1   :  { %1371 = sst [smem:[#allocation16_spill]] %s1362_s1 }
   0x2   :  { %1372 = sst [smem:[#allocation17_spill]] %s1364_s3 }
   0x3   :  { %1373 = sst [smem:[#allocation18_spill]] %s1366_s5 }
   0x4   :  { %1374 = sst [smem:[#allocation19_spill]] %s1368_s7 }
   0x5   :  { %14 = vsyncpa [#allocation3], 0 }
   0x6   :  { %16 = vsyncpa [#allocation3 + $0x1], 0 }
   0x7   :  { %17 = vsyncpa [#allocation6], 0 }
   0x8   :  { %18 = vsyncpa [#allocation9], 0 }
   0x9   :  { %19 = vsyncpa [#allocation4], 0 }
   0xa   :  { %21 = vsyncpa [#allocation4 + $0x1], 0  ;;  %s1163_s30 = smov 0   ;;  %s1165_s10 = smov 0  }
   0xb   :  { %s1167_s11 = smov 0   ;;  %s1169_s12 = smov 0  }
   0xc LB: > { %s1375_s1 = sld [smem:[#allocation16_spill]]  ;;  %s1187_s16 = sadd.s32 4294967295, %s1104_s12   ;;  %s1104_s12 = sphi %s1169_s12, %s1390_s12   ;;  %s1100_s11 = sphi %s1167_s11, %s1389_s11   ;;  %s1096_s10 = sphi %s1165_s10, %s1388_s10   ;;  %s1092_s30 = sphi %s1163_s30, %s1387_s30  }
   0xd   : > { %p739_p0 = scmp.ge.s32.totalorder %s1104_s12, 1  ;;  %p48_p1 = scmp.eq.s32.totalorder %s1187_s16, 0 }
   0xe   : > { %p252_p2 = scmp.lt.s32.totalorder %s1104_s12, 3  ;;  %s1106_s18 = smov [#allocation5]  }
   0xf   : > { %s265_s19 = sshll.u32 %s1106_s18, 4  ;;  %s1377_s5 = sld [smem:[#allocation18_spill]]  ;;  %s266_s19 = int_to_ptr.vmem [resolvable:$true] %s265_s19 }
  0x10   : > { %p1192_p3 = pnand %p739_p0, %p252_p2  ;;  %s1379_s3 = sld [smem:[#allocation17_spill]] }
  0x11   : > { %s1107_s27 = smov [#allocation8]   ;;  %s1108_s29 = smov 64  }
  0x12   : > { %s263_s15 = sshll.u32 %s1375_s1, 4  ;;  %p801_p4 = pneg %p1192_p3  ;;  %s264_s15 = int_to_ptr.hbm [resolvable:$true] %s263_s15 }
  0x13   : > { %s299_s28 = sshll.u32 %s1107_s27, 4  ;;  %s1109_s13 = smov 4   ;;  %s300_s28 = int_to_ptr.vmem [resolvable:$true] %s299_s28 }
  0x14   : > { %p1204_p6 = pnand %p801_p4, %p48_p1  ;;  %s1380_s7 = sld [smem:[#allocation19_spill]] }
  0x15   : > { %s297_s22 = sshll.u32 %s1377_s5, 4  ;;  %s1110_s21 = smov [#allocation7]   ;;  %s298_s22 = int_to_ptr.hbm [resolvable:$true] %s297_s22 }
  0x16   : > { %s280_s26 = sshll.u32 %s1379_s3, 4  ;;  %s282_s24 = sshll.u32 %s1110_s21, 4  ;;  %s281_s26 = int_to_ptr.hbm [resolvable:$true] %s280_s26  ;;  %s283_s24 = int_to_ptr.vmem [resolvable:$true] %s282_s24 }
  0x17   : > { %804 = dma.hbm_to_vmem [thread:$0]  (!%p1204_p6), %s264_s15, 128, %s266_s19, [#allocation6], %s1108_s29, %s1108_s29, %s1109_s13  }
  0x18   : > { %810 = dma.hbm_to_vmem [thread:$0]  (!%p1204_p6), %s298_s22, 128, %s300_s28, [#allocation9], %s1108_s29, %s1108_s29, %s1109_s13  }
  0x19   : > { %807 = dma.hbm_to_vmem [thread:$0]  (!%p1204_p6), %s281_s26, 128, %s283_s24, [#allocation6], %s1108_s29, %s1108_s29, %s1109_s13  }
  0x1a   : > { %s314_s20 = sshll.u32 %s1380_s7, 4  ;;  %s1111_s15 = smov [#allocation10]   ;;  %s315_s20 = int_to_ptr.hbm [resolvable:$true] %s314_s20 }
  0x1b   : > { %s316_s19 = sshll.u32 %s1111_s15, 4  ;;  %s738_s22 = sadd.s32 4294967294, %s1104_s12   ;;  %s317_s19 = int_to_ptr.vmem [resolvable:$true] %s316_s19 }
  0x1c   : > { %813 = dma.hbm_to_vmem [thread:$0]  (!%p1204_p6), %s315_s20, 128, %s317_s19, [#allocation9], %s1108_s29, %s1108_s29, %s1109_s13  }
  0x1d   : > { %s1224_s25 = sadd.s32 1, %s1104_s12   ;;  %s34_s28 = sadd.s32 1, %s1100_s11 }
  0x1e   : > { %s31_s27 = ssub.s32 %s1104_s12, %s1224_s25  ;;  %p41_p8 = scmp.ne.s32.totalorder %s1100_s11, %s1096_s10 }
  0x1f   : > { %p32_p7 = scmp.eq.s32.totalorder %s31_s27, 0  ;;  %p42_p9 = scmp.eq.s32.totalorder %s1104_s12, 0 }
  0x20   : > { %p47_p10 = scmp.ne.s32.totalorder %s1096_s10, %s1092_s30  ;;  %p239_p13 = scmp.eq.s32.totalorder %s1187_s16, 1 }
  0x21   : > { %s1235_s26 = scalar_select %p32_p7, %s1100_s11, %s34_s28  }
  0x22   : > { %p1237_p11 = por %p42_p9, %p41_p8  ;;  %p1243_p12 = por %p48_p1, %p47_p10 }
  0x23   : > { %p245_p0 = scmp.eq.s32.totalorder %s738_s22, 1  ;;  %p826_p2 = scmp.lt.s32.totalorder %s1104_s12, 2 }
  0x24   : > { %s333_s29 = sand.u32 1, %s1100_s11   ;;  %p1250_p4 = por %p239_p13, %p41_p8 }
  0x25   : > { %p1254_p6 = por %p245_p0, %p47_p10  ;;  %s745_s20 = sshll.u32 %s333_s29, 2 }
  0x26   : > { %s746_s21 = sshll.u32 %s1104_s12, 2  ;;  %s337_s27 = scalar_lea.vmem [#allocation2], %s745_s20 }
  0x27   : > { %s341_s19 = scalar_lea.hbm %s1361_s0, %s746_s21  ;;  %s345_s28 = sshll.u32 %s337_s27, 4  ;;  %s346_s28 = int_to_ptr.vmem [resolvable:$true] %s345_s28 }
  0x28   : > { %s343_s1 = sshll.u32 %s341_s19, 4  ;;  %p1264_p7 = pnand %p826_p2, %p1237_p11  ;;  %s344_s1 = int_to_ptr.hbm [resolvable:$true] %s343_s1 }
  0x29   : > { %s334_s3 = scalar_lea.sflag [#allocation3], %s333_s29  ;;  %s1000_s5 = sshra.s32 %s344_s1, 4  ;;  %s1001_s5 = int_to_ptr.hbm [resolvable:$true] %s1000_s5 }
  0x2a   : > { %s1002_s7 = scalar_lea.hbm %s1001_s5, 4  ;;  %p1004_p9 = pneg %p1264_p7 }
  0x2b   : > { %p1003_p8 = scmp.ne.s32.totalorder %s1001_s5, %s1002_s7  ;;  %s1007_s24 = scalar_lea.hbm %s1361_s0, 8 }
  0x2c   : > { %p1008_p11 = scmp.lt.s32.totalorder %s1001_s5, %s1361_s0  ;;  %p1009_p0 = scmp.lt.s32.totalorder %s1007_s24, %s1002_s7 }
  0x2d   : > { %p1005_p10 = pnand %p1004_p9, %p1003_p8 }
  0x2e   : > { %p1010_p2 = por %p1009_p0, %p1008_p11 }
  0x2f   : > { %p1006_p13 = pneg %p1005_p10 }
  0x31   : > { %p1011_p5 = pnand %p1010_p2, %p1006_p13 }
  0x33   : > { %1014 = shalt.err (!%p1011_p5)
}
  0x34   : > { %817 = dma.hbm_to_vmem [thread:$0]  (!%p1264_p7), %s344_s1, 64, %s346_s28, %s334_s3  }
  0x35   : > { %354 = sbr.rel (%p1192_p3) target bundleno = 886 (0x376), region = 56  ;;  %s1281_s29 = sand.u32 (!%p1192_p3), 1, %s1096_s10  }
  0x36   : > { %s748_s19 = sshll.u32 (!%p1192_p3), %s1281_s29, 2  ;;  %s357_s27 = scalar_lea.sflag (!%p1192_p3), [#allocation3], %s1281_s29 }
  0x37   : > { %s360_s20 = scalar_lea.vmem (!%p1192_p3), [#allocation2], %s748_s19 }
  0x3a   : > { %1075 = dma.done.wait (%p1243_p12), %s357_s27, 64  }
  0x3b   : > { %1077 = vsyncadd (%p1243_p12), %s357_s27, 4294967232 }
  0x3c   : > { %1079 = dma.done.wait (%p48_p1), [#allocation6], 256  }
  0x3d   : > { %1081 = vsyncadd (%p48_p1), [#allocation6], 4294967040 }
  0x3e   : > { %1083 = dma.done.wait (%p48_p1), [#allocation9], 256  }
  0x3f   : > { %1085 = vsyncadd (%p48_p1), [#allocation9], 4294967040  ;;  %v777_v0 = vld [vmem:[#allocation5] sm:$0xff]  ;;  %v778_v1 = vld [vmem:[#allocation7] sm:$0xff]  ;;  %vm432_vm0 = vcmask 130048   ;;  %vm536_vm1 = vcmask 64512   ;;  %s630_s21 = scalar_lea.hbm %s1370_s9, %s1187_s16 }
  0x40   : > { %v1297_v2 = vld [vmem:[%s360_s20] sm:$0xf]  ;;  %443 = vmatpush.bf16.msra.mxu0 %v777_v0  ;;  %469 = vmatpush.bf16.msra.mxu1 %v778_v1  ;;  %v779_v17 = vld [vmem:[#allocation8] sm:$0xff]  ;;  %vm565_vm2 = vcmask 1043456   ;;  %v1112_v58 = vmov 8.0   ;;  %s414_s14 = scalar_lea.vmem [#allocation11], %s1281_s29 }
  0x41   : > { %v417_v3 = vunpack.c.l.bf16 %v1297_v2  ;;  %v872_v6 = vld [vmem:[%s1365_s4] ss:$0 sm:$0xff]  ;;  %495 = vmatpush.bf16.msra.mxu2 %v779_v17  ;;  %s632_s19 = sshll.u32 %s414_s14, 4  ;;  %s634_s27 = sshll.u32 %s630_s21, 4  ;;  %vm619_vm8 = vcmask 122880   ;;  %s633_s19 = int_to_ptr.vmem [resolvable:$true] %s632_s19  ;;  %s635_s27 = int_to_ptr.hbm [resolvable:$true] %s634_s27 }
  0x42   : > { %v871_v9 = vld [vmem:[%s1363_s2] ss:$0 sm:$0xff]  ;;  %s622_s20 = scalar_lea.sflag [#allocation4], %s1281_s29  ;;  %s1044_s1 = sshra.s32 %s635_s27, 4  ;;  %s1045_s1 = int_to_ptr.hbm [resolvable:$true] %s1044_s1 }
  0x43   : > { %v418_v4 = vmax.f32 %v417_v3, 0.0  ;;  %v873_v28 = vld [vmem:[%s1367_s6] ss:$0 sm:$0xff]  ;;  %v502_v59 = vsel %vm432_vm0, %v417_v3, 0.0  ;;  %s1046_s16 = scalar_lea.hbm %s1045_s1, 1  ;;  %s1050_s7 = scalar_lea.hbm %s1370_s9, 2 }
  0x44   : > { %v780_v45 = vld [vmem:[#allocation10] sm:$0xff]  ;;  %v503_v60 = vrot.slane %v502_v59, 4  ;;  %p1047_p1 = scmp.ne.s32.totalorder %s1045_s1, %s1046_s16  ;;  %p1051_p12 = scmp.lt.s32.totalorder %s1045_s1, %s1370_s9 }
  0x45   : > { %v419_v5 = vpack.c.bf16 %v418_v4, %v418_v4  ;;  %612 = vmatpush.bf16.msrb.mxu1 %v780_v45  ;;  %v595_v2 = vld [vmem:[%s1369_s8] sm:$0x1]  ;;  %p1052_p7 = scmp.lt.s32.totalorder %s1050_s7, %s1046_s16 }
  0x46   : > { %v504_v62 = vadd.f32 %v503_v60, %v502_v59  ;;  %p1048_p3 = pnand %p1047_p1, %p1250_p4 }
  0x47   : > { %757 = vmatmul.msk.bf16.vlgmr.msra.gmra.mxu0 %vm432_vm0, %v419_v5  ;;  %762 = vmatmul.msk.bf16.vlgmr.msra.gmra.mxu1 %vm432_vm0, %v419_v5  ;;  %p1053_p8 = por %p1052_p7, %p1051_p12 }
  0x48   : > { %767 = vmatmul.msk.bf16.vlgmr.msra.gmra.mxu2 %vm432_vm0, %v419_v5  ;;  %v505_v0 = vrot.slane %v504_v62, 2  ;;  %p1049_p5 = pneg %p1048_p3 }
  0x4a   : > { %v506_v4 = vadd.f32 %v505_v0, %v504_v62  ;;  %p1054_p9 = pnand %p1053_p8, %p1049_p5 }
  0xc4   : > { %v445_v7 = vpop.f32.mrf.mxu0  ;;  %v471_v8 = vpop.f32.mrf.mxu1 }
  0xc5   : > { %v472_v10 = vadd.f32 %v872_v6, %v471_v8  ;;  %v446_v12 = vadd.f32 %v871_v9, %v445_v7  ;;  %v507_v6 = vrot.slane %v506_v4, 1 }
  0xc7   : > { %v475_v11 = vpack.c.bf16 %v472_v10, %v472_v10  ;;  %v449_v16 = vpack.c.bf16 %v446_v12, %v446_v12  ;;  %v508_v8 = vadd.f32 %v507_v6, %v506_v4 }
  0xc9   : > { %v521_v13 = vsel %vm432_vm0, %v475_v11, 0 }
  0xca   : > { %530 = vmatpush.bf16.xpose.msra.mxu3 %v521_v13 }
  0xcb   : > { %v497_v21 = vpop.f32.mrf.mxu2 }
  0xcc   : > { %v447_v14 = vpop.f32.mrf.mxu0  ;;  %v473_v15 = vpop.f32.mrf.mxu1  ;;  %v498_v29 = vadd.f32 %v873_v28, %v497_v21 }
  0xce   : > { %v501_v30 = vpack.c.bf16 %v498_v29, %v498_v29 }
  0xd0   : > { %v567_v31 = vsel %vm565_vm2, %v501_v30, 0 }
  0xd1   : > { %768 = vmatmul.msk.bf16.vlgmr.msra.gmra.mxu3 %vm432_vm0, %v449_v16  ;;  %576 = vmatpush.bf16.msrb.mxu0 %v567_v31 }
  0xd3   : > { %v499_v25 = vpop.f32.mrf.mxu2 }
 0x154   : > { %v532_v18 = vpop.f32.mrf.mxu3 }
 0x155   : > { %v537_v19 = vsel %vm536_vm1, %v532_v18, -inf }
 0x156   : > { %538 = vmax.xlane.f32.xlu0 %v537_v19 }
 0x15c   : > { %v534_v20 = vpop.f32.mrf.mxu3 }
 0x1c9   : > { %v539_v22 = vpop.xlane.xlu0 %538 }
 0x1ca   : > { %v540_v23 = vsub.f32 %v532_v18, %v539_v22 }
 0x1cc   : > { %v541_v24 = vmul.f32 1.442695, %v540_v23 }
 0x1ce   : > { %874 = vpow2.f32 %v541_v24 }
 0x1d4   : > { %v875_v26 = vpop.eup %874 }
 0x1d5   : > { %v543_v27 = vsel %vm536_vm1, %v875_v26, 0.0 }
 0x1d6   : > { %544 = vadd.xlane.f32.xlu0 %v543_v27 }
 0x249   : > { %v545_v32 = vpop.xlane.xlu0 %544 }
 0x24a   : > { %876 = vrcp.f32 %v545_v32  ;;  %v557_v36 = vand.u32 2147483648, %v545_v32  ;;  %v555_v38 = vand.u32 2147483647, %v545_v32  ;;  %vm551_vm4 = vweird.f32 %v545_v32 }
 0x24b   : > { %878 = vrcp.f32 %v1112_v58 }
 0x24c   : > { %v558_v40 = vor.u32 1.1754944e-38, %v557_v36  ;;  %vm556_vm6 = vcmp.eq.f32.partialorder %v555_v38, 8.507059e+37 }
 0x250   : > { %v877_v33 = vpop.eup %876 }
 0x251   : > { %v547_v34 = vmul.f32 %v877_v33, %v545_v32  ;;  %vm552_vm3 = vweird.f32 %v877_v33  ;;  %v879_v61 = vpop.eup %878 }
 0x252   : > { %vm553_vm5 = vmor %vm551_vm4, %vm552_vm3  ;;  %v510_v63 = vmul.f32 8.0, %v879_v61  ;;  %vm514_vm7 = vweird.f32 %v879_v61 }
 0x253   : > { %v548_v35 = vsub.f32 1.0, %v547_v34 }
 0x254   : > { %v511_v1 = vsub.f32 1.0, %v510_v63 }
 0x255   : > { %v549_v37 = vmul.f32 %v877_v33, %v548_v35 }
 0x256   : > { %v512_v5 = vmul.f32 %v879_v61, %v511_v1 }
 0x257   : > { %v550_v39 = vadd.f32 %v877_v33, %v549_v37 }
 0x258   : > { %v513_v7 = vadd.f32 %v879_v61, %v512_v5 }
 0x259   : > { %v554_v41 = vsel %vm553_vm5, %v877_v33, %v550_v39 }
 0x25a   : > { %v559_v42 = vsel %vm556_vm6, %v558_v40, %v554_v41  ;;  %v515_v9 = vsel %vm514_vm7, %v879_v61, %v513_v7 }
 0x25b   : > { %v560_v43 = vmul.f32 %v875_v26, %v559_v42  ;;  %v516_v3 = vmul.f32 %v515_v9, %v508_v8 }
 0x25d   : > { %v561_v44 = vpack.c.bf16 %v560_v43, %v560_v43 }
 0x25f   : > { %769 = vmatmul.msk.bf16.vlgmr.msrb.gmra.mxu0 %vm536_vm1, %v561_v44 }
 0x2dc   : > { %v578_v46 = vpop.f32.mrf.mxu0 }
 0x2dd   : > { %v582_v47 = vmax.f32 %v578_v46, 0.0 }
 0x2df   : > { %v583_v48 = vsel %vm432_vm0, %v582_v47, 0.0 }
 0x2e0   : > { %v584_v49 = vrot.slane %v583_v48, 4 }
 0x2e2   : > { %v585_v50 = vadd.f32 %v584_v49, %v583_v48 }
 0x2e4   : > { %v586_v51 = vrot.slane %v585_v50, 2  ;;  %v580_v52 = vpop.f32.mrf.mxu0 }
 0x2e6   : > { %v587_v53 = vadd.f32 %v586_v51, %v585_v50 }
 0x2e8   : > { %v588_v54 = vrot.slane %v587_v53, 1 }
 0x2ea   : > { %v589_v55 = vadd.f32 %v588_v54, %v587_v53 }
 0x2ec   : > { %v591_v56 = vmul.f32 0.125, %v589_v55 }
 0x2ee   : > { %v592_v57 = vpack.c.bf16 %v591_v56, %v591_v56 }
 0x2f0   : > { %774 = vmatmul.msk.bf16.vlgmr.msrb.gmra.mxu1 %vm432_vm0, %v592_v57 }
 0x36d   : > { %v614_v10 = vpop.f32.mrf.mxu1 }
 0x36e   : > { %v615_v11 = vadd.f32 %v614_v10, %v595_v2 }
 0x370   : > { %v618_v12 = vadd.f32 %v615_v11, %v516_v3 }
 0x372   : > { %620 = vst.msk [vmem:[%s414_s14] sm:$0x1] %vm619_vm8, %v618_v12 }
 0x373   : > { %1057 = shalt.err (!%p1054_p9)
}
 0x374   : > { %799 = dma.vmem_to_hbm [thread:$0]  (%p1250_p4), %s633_s19, 16, %s635_s27, %s622_s20  }
 0x375   : > { %v616_v13 = vpop.f32.mrf.mxu1 }
 0x376 PF: > { %s646_s29 = sand.u32 1, %s1092_s30   ;;  %p1386_p10 = scmp.ge.s32.totalorder %s1104_s12, 2 }
 0x377   : > { %s647_s28 = scalar_lea.sflag [#allocation4], %s646_s29 }
 0x378   : > { %p819_p13 = pnand %p1386_p10, %p1254_p6 }
 0x37a   : > { %p820_p11 = pneg %p819_p13 }
 0x37c   : > { %1087 = dma.done.wait (%p820_p11), %s647_s28, 16  }
 0x37d   : > { %1089 = vsyncadd (%p820_p11), %s647_s28, 4294967280  ;;  %p24_p0 = scmp.ge.s32.totalorder %s1224_s25, 4   ;;  %s1387_s30 = smov %s1096_s10 }
 0x37e   : > { %s1388_s10 = smov %s1100_s11  ;;  %s1389_s11 = smov %s1235_s26 }
 0x37f   : > { %s1390_s12 = smov %s1224_s25  ;;  %26 = sbr.rel (!%p24_p0) target bundleno = 12 (0xc), region = 117 }
 0x384   :  { %652 = vsyncpa [#allocation3], 1 }
 0x385   :  { %654 = vsyncpa [#allocation3 + $0x1], 1 }
 0x386   :  { %655 = vsyncpa [#allocation6], 1 }
 0x387   :  { %656 = vsyncpa [#allocation9], 1 }
 0x388   :  { %657 = vsyncpa [#allocation4], 1 }
 0x389   :  { %659 = vsyncpa [#allocation4 + $0x1], 1 }

// kernel: tpu_custom_call.1
= control target key start
LH: loop header
LB: loop body
LE: loop exit
PB: predicated region body
PF: predicated region fallthrough
CT: control target
= control target key end

     0   :  { %s1361_s0 = inlined_call_operand.hbm [shape: bf16[2,8,16], index: 0, kind: input, shape index: {}]   ;;  %s1362_s1 = inlined_call_operand.hbm [shape: bf16[16,16], index: 1, kind: input, shape index: {}]   ;;  %s1363_s2 = inlined_call_operand.vmem [shape: f32[1,16], index: 2, kind: input, shape index: {}]   ;;  %s1364_s3 = inlined_call_operand.hbm [shape: bf16[16,16], index: 3, kind: input, shape index: {}]   ;;  %s1365_s4 = inlined_call_operand.vmem [shape: f32[1,16], index: 4, kind: input, shape index: {}]   ;;  %s1366_s5 = inlined_call_operand.hbm [shape: bf16[16,16], index: 5, kind: input, shape index: {}]   ;;  %s1367_s6 = inlined_call_operand.vmem [shape: f32[1,16], index: 6, kind: input, shape index: {}]   ;;  %s1368_s7 = inlined_call_operand.hbm [shape: bf16[16,16], index: 7, kind: input, shape index: {}]   ;;  %s1369_s8 = inlined_call_operand.vmem [shape: f32[1,16], index: 8, kind: input, shape index: {}]   ;;  %s1370_s9 = inlined_call_operand.hbm [shape: f32[2,1,16], index: 9, kind: output, shape index: {}]  }
   0x1   :  { %1371 = sst [smem:[#allocation16_spill]] %s1362_s1 }
   0x2   :  { %1372 = sst [smem:[#allocation17_spill]] %s1364_s3 }
   0x3   :  { %1373 = sst [smem:[#allocation18_spill]] %s1366_s5 }
   0x4   :  { %1374 = sst [smem:[#allocation19_spill]] %s1368_s7 }
   0x5   :  { %14 = vsyncpa [#allocation3], 0 }
   0x6   :  { %16 = vsyncpa [#allocation3 + $0x1], 0 }
   0x7   :  { %17 = vsyncpa [#allocation6], 0 }
   0x8   :  { %18 = vsyncpa [#allocation9], 0 }
   0x9   :  { %19 = vsyncpa [#allocation4], 0 }
   0xa   :  { %21 = vsyncpa [#allocation4 + $0x1], 0  ;;  %s1163_s30 = smov 0   ;;  %s1165_s10 = smov 0  }
   0xb   :  { %s1167_s11 = smov 0   ;;  %s1169_s12 = smov 0  }
   0xc LB: > { %s1375_s1 = sld [smem:[#allocation16_spill]]  ;;  %s1187_s16 = sadd.s32 4294967295, %s1104_s12   ;;  %s1104_s12 = sphi %s1169_s12, %s1390_s12   ;;  %s1100_s11 = sphi %s1167_s11, %s1389_s11   ;;  %s1096_s10 = sphi %s1165_s10, %s1388_s10   ;;  %s1092_s30 = sphi %s1163_s30, %s1387_s30  }
   0xd   : > { %p739_p0 = scmp.ge.s32.totalorder %s1104_s12, 1  ;;  %p48_p1 = scmp.eq.s32.totalorder %s1187_s16, 0 }
   0xe   : > { %p252_p2 = scmp.lt.s32.totalorder %s1104_s12, 3  ;;  %s1106_s18 = smov [#allocation5]  }
   0xf   : > { %s265_s19 = sshll.u32 %s1106_s18, 4  ;;  %s1377_s5 = sld [smem:[#allocation18_spill]]  ;;  %s266_s19 = int_to_ptr.vmem [resolvable:$true] %s265_s19 }
  0x10   : > { %p1192_p3 = pnand %p739_p0, %p252_p2  ;;  %s1379_s3 = sld [smem:[#allocation17_spill]] }
  0x11   : > { %s1107_s27 = smov [#allocation8]   ;;  %s1108_s29 = smov 64  }
  0x12   : > { %s263_s15 = sshll.u32 %s1375_s1, 4  ;;  %p801_p4 = pneg %p1192_p3  ;;  %s264_s15 = int_to_ptr.hbm [resolvable:$true] %s263_s15 }
  0x13   : > { %s299_s28 = sshll.u32 %s1107_s27, 4  ;;  %s1109_s13 = smov 4   ;;  %s300_s28 = int_to_ptr.vmem [resolvable:$true] %s299_s28 }
  0x14   : > { %p1204_p6 = pnand %p801_p4, %p48_p1  ;;  %s1380_s7 = sld [smem:[#allocation19_spill]] }
  0x15   : > { %s297_s22 = sshll.u32 %s1377_s5, 4  ;;  %s1110_s21 = smov [#allocation7]   ;;  %s298_s22 = int_to_ptr.hbm [resolvable:$true] %s297_s22 }
  0x16   : > { %s280_s26 = sshll.u32 %s1379_s3, 4  ;;  %s282_s24 = sshll.u32 %s1110_s21, 4  ;;  %s281_s26 = int_to_ptr.hbm [resolvable:$true] %s280_s26  ;;  %s283_s24 = int_to_ptr.vmem [resolvable:$true] %s282_s24 }
  0x17   : > { %804 = dma.hbm_to_vmem [thread:$0]  (!%p1204_p6), %s264_s15, 128, %s266_s19, [#allocation6], %s1108_s29, %s1108_s29, %s1109_s13  }
  0x18   : > { %810 = dma.hbm_to_vmem [thread:$0]  (!%p1204_p6), %s298_s22, 128, %s300_s28, [#allocation9], %s1108_s29, %s1108_s29, %s1109_s13  }
  0x19   : > { %807 = dma.hbm_to_vmem [thread:$0]  (!%p1204_p6), %s281_s26, 128, %s283_s24, [#allocation6], %s1108_s29, %s1108_s29, %s1109_s13  }
  0x1a   : > { %s314_s20 = sshll.u32 %s1380_s7, 4  ;;  %s1111_s15 = smov [#allocation10]   ;;  %s315_s20 = int_to_ptr.hbm [resolvable:$true] %s314_s20 }
  0x1b   : > { %s316_s19 = sshll.u32 %s1111_s15, 4  ;;  %s738_s22 = sadd.s32 4294967294, %s1104_s12   ;;  %s317_s19 = int_to_ptr.vmem [resolvable:$true] %s316_s19 }
  0x1c   : > { %813 = dma.hbm_to_vmem [thread:$0]  (!%p1204_p6), %s315_s20, 128, %s317_s19, [#allocation9], %s1108_s29, %s1108_s29, %s1109_s13  }
  0x1d   : > { %s1224_s25 = sadd.s32 1, %s1104_s12   ;;  %s34_s28 = sadd.s32 1, %s1100_s11 }
  0x1e   : > { %s31_s27 = ssub.s32 %s1104_s12, %s1224_s25  ;;  %p41_p8 = scmp.ne.s32.totalorder %s1100_s11, %s1096_s10 }
  0x1f   : > { %p32_p7 = scmp.eq.s32.totalorder %s31_s27, 0  ;;  %p42_p9 = scmp.eq.s32.totalorder %s1104_s12, 0 }
  0x20   : > { %p47_p10 = scmp.ne.s32.totalorder %s1096_s10, %s1092_s30  ;;  %p239_p13 = scmp.eq.s32.totalorder %s1187_s16, 1 }
  0x21   : > { %s1235_s26 = scalar_select %p32_p7, %s1100_s11, %s34_s28  }
  0x22   : > { %p1237_p11 = por %p42_p9, %p41_p8  ;;  %p1243_p12 = por %p48_p1, %p47_p10 }
  0x23   : > { %p245_p0 = scmp.eq.s32.totalorder %s738_s22, 1  ;;  %p826_p2 = scmp.lt.s32.totalorder %s1104_s12, 2 }
  0x24   : > { %s333_s29 = sand.u32 1, %s1100_s11   ;;  %p1250_p4 = por %p239_p13, %p41_p8 }
  0x25   : > { %p1254_p6 = por %p245_p0, %p47_p10  ;;  %s745_s20 = sshll.u32 %s333_s29, 2 }
  0x26   : > { %s746_s21 = sshll.u32 %s1104_s12, 2  ;;  %s337_s27 = scalar_lea.vmem [#allocation2], %s745_s20 }
  0x27   : > { %s341_s19 = scalar_lea.hbm %s1361_s0, %s746_s21  ;;  %s345_s28 = sshll.u32 %s337_s27, 4  ;;  %s346_s28 = int_to_ptr.vmem [resolvable:$true] %s345_s28 }
  0x28   : > { %s343_s1 = sshll.u32 %s341_s19, 4  ;;  %p1264_p7 = pnand %p826_p2, %p1237_p11  ;;  %s344_s1 = int_to_ptr.hbm [resolvable:$true] %s343_s1 }
  0x29   : > { %s334_s3 = scalar_lea.sflag [#allocation3], %s333_s29  ;;  %s1000_s5 = sshra.s32 %s344_s1, 4  ;;  %s1001_s5 = int_to_ptr.hbm [resolvable:$true] %s1000_s5 }
  0x2a   : > { %s1002_s7 = scalar_lea.hbm %s1001_s5, 4  ;;  %p1004_p9 = pneg %p1264_p7 }
  0x2b   : > { %p1003_p8 = scmp.ne.s32.totalorder %s1001_s5, %s1002_s7  ;;  %s1007_s24 = scalar_lea.hbm %s1361_s0, 8 }
  0x2c   : > { %p1008_p11 = scmp.lt.s32.totalorder %s1001_s5, %s1361_s0  ;;  %p1009_p0 = scmp.lt.s32.totalorder %s1007_s24, %s1002_s7 }
  0x2d   : > { %p1005_p10 = pnand %p1004_p9, %p1003_p8 }
  0x2e   : > { %p1010_p2 = por %p1009_p0, %p1008_p11 }
  0x2f   : > { %p1006_p13 = pneg %p1005_p10 }
  0x31   : > { %p1011_p5 = pnand %p1010_p2, %p1006_p13 }
  0x33   : > { %1014 = shalt.err (!%p1011_p5)
}
  0x34   : > { %817 = dma.hbm_to_vmem [thread:$0]  (!%p1264_p7), %s344_s1, 64, %s346_s28, %s334_s3  }
  0x35   : > { %354 = sbr.rel (%p1192_p3) target bundleno = 886 (0x376), region = 56  ;;  %s1281_s29 = sand.u32 (!%p1192_p3), 1, %s1096_s10  }
  0x36   : > { %s748_s19 = sshll.u32 (!%p1192_p3), %s1281_s29, 2  ;;  %s357_s27 = scalar_lea.sflag (!%p1192_p3), [#allocation3], %s1281_s29 }
  0x37   : > { %s360_s20 = scalar_lea.vmem (!%p1192_p3), [#allocation2], %s748_s19 }
  0x3a   : > { %1075 = dma.done.wait (%p1243_p12), %s357_s27, 64  }
  0x3b   : > { %1077 = vsyncadd (%p1243_p12), %s357_s27, 4294967232 }
  0x3c   : > { %1079 = dma.done.wait (%p48_p1), [#allocation6], 256  }
  0x3d   : > { %1081 = vsyncadd (%p48_p1), [#allocation6], 4294967040 }
  0x3e   : > { %1083 = dma.done.wait (%p48_p1), [#allocation9], 256  }
  0x3f   : > { %1085 = vsyncadd (%p48_p1), [#allocation9], 4294967040  ;;  %v777_v0 = vld [vmem:[#allocation5] sm:$0xff]  ;;  %v778_v1 = vld [vmem:[#allocation7] sm:$0xff]  ;;  %vm432_vm0 = vcmask 130048   ;;  %vm536_vm1 = vcmask 64512   ;;  %s630_s21 = scalar_lea.hbm %s1370_s9, %s1187_s16 }
  0x40   : > { %v1297_v2 = vld [vmem:[%s360_s20] sm:$0xf]  ;;  %443 = vmatpush.bf16.msra.mxu0 %v777_v0  ;;  %469 = vmatpush.bf16.msra.mxu1 %v778_v1  ;;  %v779_v17 = vld [vmem:[#allocation8] sm:$0xff]  ;;  %vm565_vm2 = vcmask 1043456   ;;  %v1112_v58 = vmov 8.0   ;;  %s414_s14 = scalar_lea.vmem [#allocation11], %s1281_s29 }
  0x41   : > { %v417_v3 = vunpack.c.l.bf16 %v1297_v2  ;;  %v872_v6 = vld [vmem:[%s1365_s4] ss:$0 sm:$0xff]  ;;  %495 = vmatpush.bf16.msra.mxu2 %v779_v17  ;;  %s632_s19 = sshll.u32 %s414_s14, 4  ;;  %s634_s27 = sshll.u32 %s630_s21, 4  ;;  %vm619_vm8 = vcmask 122880   ;;  %s633_s19 = int_to_ptr.vmem [resolvable:$true] %s632_s19  ;;  %s635_s27 = int_to_ptr.hbm [resolvable:$true] %s634_s27 }
  0x42   : > { %v871_v9 = vld [vmem:[%s1363_s2] ss:$0 sm:$0xff]  ;;  %s622_s20 = scalar_lea.sflag [#allocation4], %s1281_s29  ;;  %s1044_s1 = sshra.s32 %s635_s27, 4  ;;  %s1045_s1 = int_to_ptr.hbm [resolvable:$true] %s1044_s1 }
  0x43   : > { %v418_v4 = vmax.f32 %v417_v3, 0.0  ;;  %v873_v28 = vld [vmem:[%s1367_s6] ss:$0 sm:$0xff]  ;;  %v502_v59 = vsel %vm432_vm0, %v417_v3, 0.0  ;;  %s1046_s16 = scalar_lea.hbm %s1045_s1, 1  ;;  %s1050_s7 = scalar_lea.hbm %s1370_s9, 2 }
  0x44   : > { %v780_v45 = vld [vmem:[#allocation10] sm:$0xff]  ;;  %v503_v60 = vrot.slane %v502_v59, 4  ;;  %p1047_p1 = scmp.ne.s32.totalorder %s1045_s1, %s1046_s16  ;;  %p1051_p12 = scmp.lt.s32.totalorder %s1045_s1, %s1370_s9 }
  0x45   : > { %v419_v5 = vpack.c.bf16 %v418_v4, %v418_v4  ;;  %612 = vmatpush.bf16.msrb.mxu1 %v780_v45  ;;  %v595_v2 = vld [vmem:[%s1369_s8] sm:$0x1]  ;;  %p1052_p7 = scmp.lt.s32.totalorder %s1050_s7, %s1046_s16 }
  0x46   : > { %v504_v62 = vadd.f32 %v503_v60, %v502_v59  ;;  %p1048_p3 = pnand %p1047_p1, %p1250_p4 }
  0x47   : > { %757 = vmatmul.msk.bf16.vlgmr.msra.gmra.mxu0 %vm432_vm0, %v419_v5  ;;  %762 = vmatmul.msk.bf16.vlgmr.msra.gmra.mxu1 %vm432_vm0, %v419_v5  ;;  %p1053_p8 = por %p1052_p7, %p1051_p12 }
  0x48   : > { %767 = vmatmul.msk.bf16.vlgmr.msra.gmra.mxu2 %vm432_vm0, %v419_v5  ;;  %v505_v0 = vrot.slane %v504_v62, 2  ;;  %p1049_p5 = pneg %p1048_p3 }
  0x4a   : > { %v506_v4 = vadd.f32 %v505_v0, %v504_v62  ;;  %p1054_p9 = pnand %p1053_p8, %p1049_p5 }
  0xc4   : > { %v445_v7 = vpop.f32.mrf.mxu0  ;;  %v471_v8 = vpop.f32.mrf.mxu1 }
  0xc5   : > { %v472_v10 = vadd.f32 %v872_v6, %v471_v8  ;;  %v446_v12 = vadd.f32 %v871_v9, %v445_v7  ;;  %v507_v6 = vrot.slane %v506_v4, 1 }
  0xc7   : > { %v475_v11 = vpack.c.bf16 %v472_v10, %v472_v10  ;;  %v449_v16 = vpack.c.bf16 %v446_v12, %v446_v12  ;;  %v508_v8 = vadd.f32 %v507_v6, %v506_v4 }
  0xc9   : > { %v521_v13 = vsel %vm432_vm0, %v475_v11, 0 }
  0xca   : > { %530 = vmatpush.bf16.xpose.msra.mxu3 %v521_v13 }
  0xcb   : > { %v497_v21 = vpop.f32.mrf.mxu2 }
  0xcc   : > { %v447_v14 = vpop.f32.mrf.mxu0  ;;  %v473_v15 = vpop.f32.mrf.mxu1  ;;  %v498_v29 = vadd.f32 %v873_v28, %v497_v21 }
  0xce   : > { %v501_v30 = vpack.c.bf16 %v498_v29, %v498_v29 }
  0xd0   : > { %v567_v31 = vsel %vm565_vm2, %v501_v30, 0 }
  0xd1   : > { %768 = vmatmul.msk.bf16.vlgmr.msra.gmra.mxu3 %vm432_vm0, %v449_v16  ;;  %576 = vmatpush.bf16.msrb.mxu0 %v567_v31 }
  0xd3   : > { %v499_v25 = vpop.f32.mrf.mxu2 }
 0x154   : > { %v532_v18 = vpop.f32.mrf.mxu3 }
 0x155   : > { %v537_v19 = vsel %vm536_vm1, %v532_v18, -inf }
 0x156   : > { %538 = vmax.xlane.f32.xlu0 %v537_v19 }
 0x15c   : > { %v534_v20 = vpop.f32.mrf.mxu3 }
 0x1c9   : > { %v539_v22 = vpop.xlane.xlu0 %538 }
 0x1ca   : > { %v540_v23 = vsub.f32 %v532_v18, %v539_v22 }
 0x1cc   : > { %v541_v24 = vmul.f32 1.442695, %v540_v23 }
 0x1ce   : > { %874 = vpow2.f32 %v541_v24 }
 0x1d4   : > { %v875_v26 = vpop.eup %874 }
 0x1d5   : > { %v543_v27 = vsel %vm536_vm1, %v875_v26, 0.0 }
 0x1d6   : > { %544 = vadd.xlane.f32.xlu0 %v543_v27 }
 0x249   : > { %v545_v32 = vpop.xlane.xlu0 %544 }
 0x24a   : > { %876 = vrcp.f32 %v545_v32  ;;  %v557_v36 = vand.u32 2147483648, %v545_v32  ;;  %v555_v38 = vand.u32 2147483647, %v545_v32  ;;  %vm551_vm4 = vweird.f32 %v545_v32 }
 0x24b   : > { %878 = vrcp.f32 %v1112_v58 }
 0x24c   : > { %v558_v40 = vor.u32 1.1754944e-38, %v557_v36  ;;  %vm556_vm6 = vcmp.eq.f32.partialorder %v555_v38, 8.507059e+37 }
 0x250   : > { %v877_v33 = vpop.eup %876 }
 0x251   : > { %v547_v34 = vmul.f32 %v877_v33, %v545_v32  ;;  %vm552_vm3 = vweird.f32 %v877_v33  ;;  %v879_v61 = vpop.eup %878 }
 0x252   : > { %vm553_vm5 = vmor %vm551_vm4, %vm552_vm3  ;;  %v510_v63 = vmul.f32 8.0, %v879_v61  ;;  %vm514_vm7 = vweird.f32 %v879_v61 }
 0x253   : > { %v548_v35 = vsub.f32 1.0, %v547_v34 }
 0x254   : > { %v511_v1 = vsub.f32 1.0, %v510_v63 }
 0x255   : > { %v549_v37 = vmul.f32 %v877_v33, %v548_v35 }
 0x256   : > { %v512_v5 = vmul.f32 %v879_v61, %v511_v1 }
 0x257   : > { %v550_v39 = vadd.f32 %v877_v33, %v549_v37 }
 0x258   : > { %v513_v7 = vadd.f32 %v879_v61, %v512_v5 }
 0x259   : > { %v554_v41 = vsel %vm553_vm5, %v877_v33, %v550_v39 }
 0x25a   : > { %v559_v42 = vsel %vm556_vm6, %v558_v40, %v554_v41  ;;  %v515_v9 = vsel %vm514_vm7, %v879_v61, %v513_v7 }
 0x25b   : > { %v560_v43 = vmul.f32 %v875_v26, %v559_v42  ;;  %v516_v3 = vmul.f32 %v515_v9, %v508_v8 }
 0x25d   : > { %v561_v44 = vpack.c.bf16 %v560_v43, %v560_v43 }
 0x25f   : > { %769 = vmatmul.msk.bf16.vlgmr.msrb.gmra.mxu0 %vm536_vm1, %v561_v44 }
 0x2dc   : > { %v578_v46 = vpop.f32.mrf.mxu0 }
 0x2dd   : > { %v582_v47 = vmax.f32 %v578_v46, 0.0 }
 0x2df   : > { %v583_v48 = vsel %vm432_vm0, %v582_v47, 0.0 }
 0x2e0   : > { %v584_v49 = vrot.slane %v583_v48, 4 }
 0x2e2   : > { %v585_v50 = vadd.f32 %v584_v49, %v583_v48 }
 0x2e4   : > { %v586_v51 = vrot.slane %v585_v50, 2  ;;  %v580_v52 = vpop.f32.mrf.mxu0 }
 0x2e6   : > { %v587_v53 = vadd.f32 %v586_v51, %v585_v50 }
 0x2e8   : > { %v588_v54 = vrot.slane %v587_v53, 1 }
 0x2ea   : > { %v589_v55 = vadd.f32 %v588_v54, %v587_v53 }
 0x2ec   : > { %v591_v56 = vmul.f32 0.125, %v589_v55 }
 0x2ee   : > { %v592_v57 = vpack.c.bf16 %v591_v56, %v591_v56 }
 0x2f0   : > { %774 = vmatmul.msk.bf16.vlgmr.msrb.gmra.mxu1 %vm432_vm0, %v592_v57 }
 0x36d   : > { %v614_v10 = vpop.f32.mrf.mxu1 }
 0x36e   : > { %v615_v11 = vadd.f32 %v614_v10, %v595_v2 }
 0x370   : > { %v618_v12 = vadd.f32 %v615_v11, %v516_v3 }
 0x372   : > { %620 = vst.msk [vmem:[%s414_s14] sm:$0x1] %vm619_vm8, %v618_v12 }
 0x373   : > { %1057 = shalt.err (!%p1054_p9)
}
 0x374   : > { %799 = dma.vmem_to_hbm [thread:$0]  (%p1250_p4), %s633_s19, 16, %s635_s27, %s622_s20  }
 0x375   : > { %v616_v13 = vpop.f32.mrf.mxu1 }
 0x376 PF: > { %s646_s29 = sand.u32 1, %s1092_s30   ;;  %p1386_p10 = scmp.ge.s32.totalorder %s1104_s12, 2 }
 0x377   : > { %s647_s28 = scalar_lea.sflag [#allocation4], %s646_s29 }
 0x378   : > { %p819_p13 = pnand %p1386_p10, %p1254_p6 }
 0x37a   : > { %p820_p11 = pneg %p819_p13 }
 0x37c   : > { %1087 = dma.done.wait (%p820_p11), %s647_s28, 16  }
 0x37d   : > { %1089 = vsyncadd (%p820_p11), %s647_s28, 4294967280  ;;  %p24_p0 = scmp.ge.s32.totalorder %s1224_s25, 4   ;;  %s1387_s30 = smov %s1096_s10 }
 0x37e   : > { %s1388_s10 = smov %s1100_s11  ;;  %s1389_s11 = smov %s1235_s26 }
 0x37f   : > { %s1390_s12 = smov %s1224_s25  ;;  %26 = sbr.rel (!%p24_p0) target bundleno = 12 (0xc), region = 117 }
 0x384   :  { %652 = vsyncpa [#allocation3], 1 }
 0x385   :  { %654 = vsyncpa [#allocation3 + $0x1], 1 }
 0x386   :  { %655 = vsyncpa [#allocation6], 1 }
 0x387   :  { %656 = vsyncpa [#allocation9], 1 }
 0x388   :  { %657 = vsyncpa [#allocation4], 1 }
 0x389   :  { %659 = vsyncpa [#allocation4 + $0x1], 1 }

</bundles_post_ra>
